<compile_context>
chip_gen: v7x
topology: tpu7x:2x2x1
jax: 0.10.0
libtpu: 0.0.40
codegen_flags: <defaults>
</compile_context>

<pallas_src>
import functools
import math

import jax
import jax.numpy as jnp
from jax.experimental import pallas as pl
from jax.experimental.pallas import tpu as pltpu

_LANE = 128
_LN2 = math.log(2.0)
_VMEM_LIMIT_BYTES = 32 << 20     # safe on all gens (v7x: 64 MiB physical per TC)


def _sublane_multiple(dtype) -> int:
    # minimum sublane tiling: f32 -> 8, bf16 -> 16, int8/fp8 -> 32
    itemsize = jnp.dtype(dtype).itemsize
    return max(8, 32 // max(itemsize, 1))


def _tpu_caps():
    """Return (tensorcores sharing the parallel grid axis, max tile bytes)."""
    num_cores, max_tile_bytes = 1, 3 << 20           # conservative (v5e-safe) fallback
    try:
        kind = jax.devices()[0].device_kind.lower()
    except Exception:
        return num_cores, max_tile_bytes
    if "v7" in kind:
        num_cores, max_tile_bytes = 2, 4 << 20       # 2 TCs; 4x4 MiB << 32 MiB scoped
    elif "v6" in kind:
        num_cores, max_tile_bytes = 1, 4 << 20       # v6e has the scoped-VMEM headroom
    return num_cores, max_tile_bytes


def _choose_block_rows(rows: int, sub: int, max_rows: int, num_cores: int) -> int:
    """Pick the sublane extent of one (block_rows, 128) tile."""
    # Tiny input, or single-TC chip that fits in one tile: one full-extent block.
    if rows <= sub or (num_cores == 1 and rows <= max_rows):
        return rows
    min_steps = 2 * num_cores if num_cores > 1 else 1
    block_rows = max_rows
    steps = -(-rows // block_rows)
    if steps < min_steps:
        # Shrink tiles so every TensorCore gets >= 2 pipelined steps.
        block_rows = -(-rows // min_steps)
    elif num_cores > 1 and steps % num_cores:
        # Round the step count up to an even grid so neither v7x core idles.
        steps = -(-steps // num_cores) * num_cores
        block_rows = -(-rows // steps)
    block_rows = -(-block_rows // sub) * sub          # keep (8,128)-style alignment
    return max(sub, min(block_rows, max_rows))


def _psoftplus_kernel(params_ref, x_ref, o_ref, *, threshold: float):
    # params_ref: SMEM (2,) f32 = [beta + eps, 1 / (beta + eps)]
    # x_ref / o_ref: (block_rows, 128) VMEM tiles.
    b = params_ref[0]
    inv_b = params_ref[1]
    thr = jnp.float32(threshold)

    x = x_ref[...].astype(jnp.float32)
    bx = b * x
    # softplus with threshold: linear above threshold, log1p(exp(.)) below.
    # Clamp the exp argument so the unused branch never produces inf/nan.
    sp = jnp.where(bx > thr, bx, jnp.log1p(jnp.exp(jnp.minimum(bx, thr))))
    o_ref[...] = ((sp - jnp.float32(_LN2)) * inv_b).astype(o_ref.dtype)


def parametric_softplus(x, log_beta, *, threshold: float = 20.0, eps: float = 1e-3):
    """Elementwise ParametricSoftplus via a Pallas TPU kernel."""
    orig_shape = x.shape
    orig_dtype = x.dtype
    n = x.size

    # Hoist the scalar parameter math out of the kernel (a couple of scalar XLA ops).
    beta = jnp.exp(jnp.asarray(log_beta, jnp.float32).reshape(-1)[0])
    b = beta + jnp.float32(eps)
    inv_b = jnp.float32(1.0) / b
    params = jnp.stack([b, inv_b]).astype(jnp.float32)

    flat = x.reshape(-1)
    bulk = (n // _LANE) * _LANE                       # 128-aligned prefix -> kernel
    rows = bulk // _LANE
    thr = jnp.float32(threshold)
    ln2 = jnp.float32(_LN2)

    pieces = []
    if rows > 0:
        x2d = flat[:bulk].reshape(rows, _LANE)        # pure view reshape, no extra pass

        itemsize = jnp.dtype(orig_dtype).itemsize
        sub = _sublane_multiple(orig_dtype)
        num_cores, max_tile_bytes = _tpu_caps()
        max_rows = max(sub, (max_tile_bytes // (_LANE * itemsize)) // sub * sub)
        block_rows = _choose_block_rows(rows, sub, max_rows, num_cores)
        grid = (pl.cdiv(rows, block_rows),)

        cost = pl.CostEstimate(
            flops=5 * bulk,
            transcendentals=2 * bulk,                 # exp + log1p
            bytes_accessed=2 * bulk * itemsize,       # read x, write y
        )

        kernel = functools.partial(_psoftplus_kernel, threshold=float(threshold))
        out2d = pl.pallas_call(
            kernel,
            out_shape=jax.ShapeDtypeStruct((rows, _LANE), orig_dtype),
            grid=grid,
            in_specs=[
                pl.BlockSpec(memory_space=pltpu.SMEM),                 # [b, 1/b] scalars
                pl.BlockSpec((block_rows, _LANE), lambda i: (i, 0)),
            ],
            out_specs=pl.BlockSpec((block_rows, _LANE), lambda i: (i, 0)),
            compiler_params=pltpu.CompilerParams(
                dimension_semantics=("parallel",),
                vmem_limit_bytes=_VMEM_LIMIT_BYTES,
            ),
            cost_estimate=cost,
        )(params, x2d)
        pieces.append(out2d.reshape(-1))

    if bulk != n:
        # <128-element ragged tail: plain jnp with the exact same math as the kernel.
        t = flat[bulk:].astype(jnp.float32)
        bt = b * t
        sp = jnp.where(bt > thr, bt, jnp.log1p(jnp.exp(jnp.minimum(bt, thr))))
        pieces.append(((sp - ln2) * inv_b).astype(orig_dtype))

    out_flat = pieces[0] if len(pieces) == 1 else jnp.concatenate(pieces)
    return out_flat.reshape(orig_shape)


def _reference(x, log_beta, *, threshold: float = 20.0, eps: float = 1e-3):
    beta = jnp.exp(log_beta[0])
    b = beta + eps
    bx = b * x
    sp = jnp.where(bx > threshold, bx, jnp.log1p(jnp.exp(jnp.minimum(bx, threshold))))
    return (sp - math.log(2.0)) / b


if __name__ == "__main__":
    # Deterministic parameter init mirroring the module's __init__:
    init_beta = 5.0
    log_beta = jnp.array([math.log(init_beta)], dtype=jnp.float32)

    key = jax.random.PRNGKey(0)
    x = jax.random.normal(key, (2, 4, 16, 16), dtype=jnp.float32) * 3.0  # NCHW

    y = jax.block_until_ready(parametric_softplus(x, log_beta))
    y_ref = _reference(x, log_beta)
    assert y.shape == x.shape and y.dtype == x.dtype
    assert jnp.allclose(y, y_ref, atol=1e-5, rtol=1e-5), "mismatch vs reference"

    # Ragged (non-multiple-of-128) size: the 128-aligned bulk goes through the
    # kernel, the 26-element tail is computed with plain jnp -- no pad/slice pass.
    x2 = jax.random.normal(jax.random.PRNGKey(1), (3, 50, 7), dtype=jnp.float32) * 3.0
    y2 = jax.block_until_ready(parametric_softplus(x2, log_beta))
    assert y2.shape == x2.shape and y2.dtype == x2.dtype
    assert jnp.allclose(y2, _reference(x2, log_beta), atol=1e-5, rtol=1e-5)

    print("KERNEL_OK")
</pallas_src>

<mosaic_0001>
module attributes {stable_mosaic.version = 11 : i64} {
  func.func @_psoftplus_kernel(%arg0: i32, %arg1: memref<2xf32, #tpu.memory_space<smem>>, %arg2: memref<16x128xf32, #tpu.memory_space<vmem>>, %arg3: memref<16x128xf32, #tpu.memory_space<vmem>>) attributes {dimension_semantics = [#tpu.dimension_semantics<parallel>], iteration_bounds = array<i64: 1>, scalar_prefetch = 0 : i64, scratch_operands = 0 : i64, tpu.core_type = #tpu.core_type<tc>, window_params = [{transform_indices = @transform_0, window_bounds = array<i64: 2>}, {transform_indices = @transform_1, window_bounds = array<i64: 16, 128>}, {transform_indices = @transform_2, window_bounds = array<i64: 16, 128>}]} {
    %c0 = arith.constant 0 : index
    %0 = memref.load %arg1[%c0] : memref<2xf32, #tpu.memory_space<smem>>
    %c1 = arith.constant 1 : index
    %1 = memref.load %arg1[%c1] : memref<2xf32, #tpu.memory_space<smem>>
    %c0_0 = arith.constant 0 : index
    %c0_1 = arith.constant 0 : index
    %2 = vector.load %arg2[%c0_0, %c0_1] : memref<16x128xf32, #tpu.memory_space<vmem>>, vector<16x128xf32>
    %3 = vector.broadcast %0 : f32 to vector<16x128xf32>
    %4 = arith.mulf %3, %2 : vector<16x128xf32>
    %cst = arith.constant 2.000000e+01 : f32
    %5 = vector.broadcast %cst : f32 to vector<16x128xf32>
    %6 = arith.cmpf ogt, %4, %5 : vector<16x128xf32>
    %cst_2 = arith.constant 2.000000e+01 : f32
    %7 = vector.broadcast %cst_2 : f32 to vector<16x128xf32>
    %8 = arith.minimumf %4, %7 : vector<16x128xf32>
    %9 = math.exp %8 : vector<16x128xf32>
    %10 = math.log1p %9 : vector<16x128xf32>
    %11 = arith.select %6, %4, %10 : vector<16x128xi1>, vector<16x128xf32>
    %cst_3 = arith.constant 0.693147182 : f32
    %12 = vector.broadcast %cst_3 : f32 to vector<16x128xf32>
    %13 = arith.subf %11, %12 : vector<16x128xf32>
    %14 = vector.broadcast %1 : f32 to vector<16x128xf32>
    %15 = arith.mulf %13, %14 : vector<16x128xf32>
    %c0_4 = arith.constant 0 : index
    %c0_5 = arith.constant 0 : index
    %16 = vector.load %arg3[%c0_4, %c0_5] : memref<16x128xf32, #tpu.memory_space<vmem>>, vector<16x128xf32>
    tpu.vector_store %arg3[%c0_4, %c0_5], %15 {strides = array<i32>} : memref<16x128xf32, #tpu.memory_space<vmem>>, vector<16x128xf32>,
    return
  }
  func.func @transform_0(%arg0: i32) -> i32 {
    %c0_i32 = arith.constant 0 : i32
    %c0_i32_0 = arith.constant 0 : i32
    return %c0_i32 : i32
  }
  func.func @transform_1(%arg0: i32) -> (i32, i32) {
    %c0_i32 = arith.constant 0 : i32
    %c0_i32_0 = arith.constant 0 : i32
    return %arg0, %c0_i32 : i32, i32
  }
  func.func @transform_2(%arg0: i32) -> (i32, i32) {
    %c0_i32 = arith.constant 0 : i32
    %c0_i32_0 = arith.constant 0 : i32
    return %arg0, %c0_i32 : i32, i32
  }
}

</mosaic_0001>

<bundles_post_ra>
// kernel: tpu_custom_call.1
= control target key start
LH: loop header
LB: loop body
LE: loop exit
PB: predicated region body
PF: predicated region fallthrough
CT: control target
= control target key end

     0   :  { %7 = vsyncpa [#allocation5], 0  ;;  %s235_s0 = inlined_call_operand.hbm [shape: f32[2], index: 0, kind: input, shape index: {}]   ;;  %s236_s1 = inlined_call_operand.hbm [shape: f32[16,128], index: 1, kind: input, shape index: {}]   ;;  %s237_s2 = inlined_call_operand.hbm [shape: f32[16,128], index: 2, kind: output, shape index: {}]  }
   0x1   :  { %8 = vsyncpa [#allocation3], 0 }
   0x2   :  { %9 = vsyncpa [#allocation4], 0  ;;  %s113_s11 = scalar_lea.hbm %s235_s0, 16 }
   0x3   :  { %p114_p0 = scmp.ne.s32.totalorder %s235_s0, %s113_s11  ;;  %p117_p1 = scmp.lt.u32.totalorder %s113_s11, %s235_s0 }
   0x5   :  { %p119_p2 = pnand %p117_p1, %p114_p0 }
   0x7   :  { %122 = shalt.err (!%p119_p2)
}
   0x8   :  { %s173_s16 = smov [#allocation2]   ;;  %s174_s19 = smov [#allocation6]  }
   0x9   :  { %17 = dma.hbm_to_smem %s235_s0, 16, %s173_s16, [#allocation5]  }
   0xa   :  { %s23_s20 = sshll.u32 %s174_s19, 4  ;;  %s123_s23 = scalar_lea.hbm %s236_s1, 256  ;;  %s24_s20 = int_to_ptr.vmem [resolvable:$true] %s23_s20 }
   0xb   :  { %p124_p3 = scmp.ne.s32.totalorder %s236_s1, %s123_s23  ;;  %p127_p4 = scmp.lt.u32.totalorder %s123_s23, %s236_s1 }
   0xd   :  { %p129_p5 = pnand %p127_p4, %p124_p3 }
   0xf   :  { %132 = shalt.err (!%p129_p5)
}
  0x10   :  { %s133_s28 = scalar_lea.vmem %s24_s20, 256  ;;  %p138_p7 = scmp.lt.s32.totalorder %s24_s20, %s24_s20 }
  0x11   :  { %p134_p6 = scmp.ne.s32.totalorder %s24_s20, %s133_s28  ;;  %p139_p8 = scmp.lt.s32.totalorder %s133_s28, %s133_s28 }
  0x13   :  { %p140_p9 = por %p139_p8, %p138_p7 }
  0x15   :  { %p141_p10 = pnand %p140_p9, %p134_p6 }
  0x17   :  { %144 = shalt.err (!%p141_p10)
}
  0x18   :  { %s175_s0 = smov 128   ;;  %s176_s29 = smov 8  }
  0x19   :  { %29 = dma.hbm_to_vmem [thread:$0]  %s236_s1, 256, %s24_s20, [#allocation3], %s175_s0, %s175_s0, %s176_s29  }
  0x1a   :  { %167 = dma.done.wait [#allocation5], 16  }
  0x1b   :  { %168 = vsyncadd [#allocation5], 4294967280 }
  0x1c   :  { %169 = dma.done.wait [#allocation3], 256  }
  0x1d   :  { %170 = vsyncadd [#allocation3], 4294967040 }
  0x1e   :  { %36 = sfence }
  0x1f   :  { %s37_s4 = sld [smem:[#allocation2]]  ;;  %v39_v0 = vld [vmem:[#allocation6] sm:$0xff]  ;;  %v40_v1 = vld [vmem:[#allocation6 + $0x8] sm:$0xff]  ;;  %s97_s1 = sld [smem:[#allocation2 + $0x1]] }
  0x20   :  { %s177_s5 = smov [#allocation7]  }
  0x21   :  { %s84_s6 = sshll.u32 %s177_s5, 4  ;;  %s85_s6 = int_to_ptr.vmem [resolvable:$true] %s84_s6 }
  0x22   :  { %s145_s7 = scalar_lea.vmem %s85_s6, 256  ;;  %p150_p12 = scmp.lt.s32.totalorder %s85_s6, %s85_s6 }
  0x23   :  { %p146_p11 = scmp.ne.s32.totalorder %s85_s6, %s145_s7  ;;  %p151_p13 = scmp.lt.s32.totalorder %s145_s7, %s145_s7 }
  0x25   :  { %v41_v2 = vstv %s37_s4  ;;  %v74_v27 = vstv %s97_s1  ;;  %p152_p0 = por %p151_p13, %p150_p12 }
  0x26   :  { %v42_v3 = vmul.f32 %v41_v2, %v39_v0  ;;  %v43_v4 = vmul.f32 %v41_v2, %v40_v1 }
  0x27   :  { %p153_p1 = pnand %p152_p0, %p146_p11 }
  0x28   :  { %v46_v5 = vmin.f32 %v42_v3, 20.0  ;;  %v47_v6 = vmin.f32 %v43_v4, 20.0  ;;  %vm44_vm1 = vcmp.gt.f32.partialorder %v42_v3, 20.0  ;;  %vm45_vm3 = vcmp.gt.f32.partialorder %v43_v4, 20.0 }
  0x2a   :  { %v48_v7 = vmul.f32 1.442695, %v46_v5  ;;  %v50_v8 = vmul.f32 1.442695, %v47_v6 }
  0x2c   :  { %105 = vpow2.f32 %v48_v7 }
  0x2d   :  { %107 = vpow2.f32 %v50_v8 }
  0x36   :  { %v106_v9 = vpop.eup %105 }
  0x37   :  { %v108_v10 = vpop.eup %107  ;;  %v52_v11 = vadd.f32 1.0, %v106_v9  ;;  %v55_v13 = vmul.f32 -0.5, %v106_v9  ;;  %v58_v16 = vand.u32 2147483647, %v106_v9 }
  0x38   :  { %v61_v12 = vadd.f32 1.0, %v108_v10  ;;  %v64_v14 = vmul.f32 -0.5, %v108_v10  ;;  %v67_v18 = vand.u32 2147483647, %v108_v10 }
  0x39   :  { %109 = vlog2.f32 %v52_v11  ;;  %v56_v15 = vadd.f32 1.0, %v55_v13  ;;  %vm59_vm0 = vcmp.lt.f32.partialorder %v58_v16, 0.0004427343 }
  0x3a   :  { %111 = vlog2.f32 %v61_v12  ;;  %v65_v17 = vadd.f32 1.0, %v64_v14  ;;  %vm68_vm2 = vcmp.lt.f32.partialorder %v67_v18, 0.0004427343 }
  0x3b   :  { %v57_v19 = vmul.f32 %v106_v9, %v56_v15 }
  0x3c   :  { %v66_v21 = vmul.f32 %v108_v10, %v65_v17 }
  0x43   :  { %v110_v20 = vpop.eup %109 }
  0x44   :  { %v112_v22 = vpop.eup %111  ;;  %v54_v23 = vmul.f32 0.6931472, %v110_v20 }
  0x45   :  { %v63_v24 = vmul.f32 0.6931472, %v112_v22 }
  0x46   :  { %v60_v25 = vsel %vm59_vm0, %v57_v19, %v54_v23 }
  0x47   :  { %v70_v26 = vsel %vm44_vm1, %v42_v3, %v60_v25  ;;  %v69_v28 = vsel %vm68_vm2, %v66_v21, %v63_v24 }
  0x48   :  { %v98_v29 = vadd.f32 -0.6931472, %v70_v26  ;;  %v71_v30 = vsel %vm45_vm3, %v43_v4, %v69_v28 }
  0x49   :  { %v99_v31 = vadd.f32 -0.6931472, %v71_v30 }
  0x4a   :  { %v75_v32 = vmul.f32 %v98_v29, %v74_v27 }
  0x4b   :  { %v76_v33 = vmul.f32 %v99_v31, %v74_v27 }
  0x4c   :  { %77 = vst [vmem:[#allocation7] sm:$0xff] %v75_v32 }
  0x4d   :  { %78 = vst [vmem:[#allocation7 + $0x8] sm:$0xff] %v76_v33 }
  0x4e   :  { %156 = shalt.err (!%p153_p1)
}
  0x4f   :  { %s157_s10 = scalar_lea.hbm %s237_s2, 256 }
  0x50   :  { %p158_p2 = scmp.ne.s32.totalorder %s237_s2, %s157_s10  ;;  %p161_p3 = scmp.lt.u32.totalorder %s157_s10, %s237_s2 }
  0x52   :  { %p163_p4 = pnand %p161_p3, %p158_p2 }
  0x54   :  { %166 = shalt.err (!%p163_p4)
}
  0x55   :  { %90 = dma.vmem_to_hbm [thread:$0]  %s85_s6, 256, %s237_s2, [#allocation4], %s175_s0, %s175_s0, %s176_s29  }
  0x56   :  { %171 = dma.done.wait [#allocation4], 256  }
  0x57   :  { %172 = vsyncadd [#allocation4], 4294967040 }
  0x58   :  { %94 = vsyncpa [#allocation3], 1 }
  0x59   :  { %95 = vsyncpa [#allocation4], 1 }
  0x5a   :  { %96 = vsyncpa [#allocation5], 1 }

</bundles_post_ra>
